<compile_context>
chip_gen: v5e
topology: v5e:2x2
jax: 0.10.0
libtpu: 0.0.40
codegen_flags: <defaults>
</compile_context>

<pallas_src>
import dataclasses
from typing import Any, List, Optional, Tuple

import jax
import jax.numpy as jnp
from jax.experimental import pallas as pl
from jax.experimental.pallas import tpu as pltpu


# ---------------------------------------------------------------------------
# Host-side meta-information (mirrors SampleMetaInformation in PytorchRouting)
# ---------------------------------------------------------------------------
@dataclasses.dataclass
class SampleMetaInformation:
    task: Optional[Any] = None
    # The original class also accumulates actions / states / rewards during
    # routing; only `task` is touched by Initialization.__init__ / forward.


# ---------------------------------------------------------------------------
# Pallas HBM -> HBM copy kernel (used only when materialize=True)
# ---------------------------------------------------------------------------
_SMALL_BYPASS_BYTES = 256 * 1024  # below this, skip the kernel entirely


def _hbm_copy_kernel(x_hbm_ref, o_hbm_ref, sem):
    # Single DMA-engine transfer HBM -> HBM for the whole array.
    # No VMEM staging, no vreg traffic, no grid-step pipeline overhead.
    cp = pltpu.make_async_copy(x_hbm_ref, o_hbm_ref, sem)
    cp.start()
    cp.wait()


def _pallas_hbm_copy(xs: jax.Array) -> jax.Array:
    """Materialize a distinct HBM buffer holding a copy of xs via one DMA."""
    nbytes = int(xs.size) * int(xs.dtype.itemsize)
    return pl.pallas_call(
        _hbm_copy_kernel,
        out_shape=jax.ShapeDtypeStruct(xs.shape, xs.dtype),
        in_specs=[pl.BlockSpec(memory_space=pl.ANY)],
        out_specs=pl.BlockSpec(memory_space=pl.ANY),
        scratch_shapes=[pltpu.SemaphoreType.DMA],
        # Pure-bandwidth op: read + write every byte, no flops.
        cost_estimate=pl.CostEstimate(
            flops=0, transcendentals=0, bytes_accessed=2 * nbytes
        ),
    )(xs)


# ---------------------------------------------------------------------------
# Module wrapper: Initialization.forward
# ---------------------------------------------------------------------------
def initialization_forward(
    xs: jax.Array,
    tasks: Tuple[Any, ...] = (),
    *,
    materialize: bool = False,
    small_bypass_bytes: int = _SMALL_BYPASS_BYTES,
) -> Tuple[jax.Array, List[SampleMetaInformation], None]:
    """Equivalent of Initialization().forward(xs, tasks)."""
    n = int(xs.shape[0])

    # Meta-information triplet construction (host-side Python objects).
    # TODO(synk): SampleMetaInformation is inherently host-side bookkeeping;
    # it has no device/kernel equivalent and is built in Python as in PyTorch.
    if len(tasks) > 0:
        mxs = [SampleMetaInformation(task=t) for t in tasks]
    else:
        mxs = [SampleMetaInformation() for _ in range(n)]

    # Hot path: the module is a pure identity on xs -> return it untouched
    # (no HBM round trip, no kernel launch).
    if not materialize:
        return xs, mxs, None

    # Tiny tensors bypass the kernel: fixed pallas_call overhead would
    # dominate the copy itself.
    if int(xs.size) * int(xs.dtype.itemsize) < small_bypass_bytes:
        return xs, mxs, None

    # Real materialized copy: single HBM->HBM DMA, no aliasing, no reshape.
    ys = _pallas_hbm_copy(xs)
    return ys, mxs, None


# ---------------------------------------------------------------------------
if __name__ == "__main__":
    key = jax.random.PRNGKey(0)
    # NCHW, as PyTorch conv-style inputs: batch=2, channels=4, spatial=16x16
    xs = jax.random.normal(key, (2, 4, 16, 16), dtype=jnp.float32)

    # Case 1: default (zero-copy) path, no tasks.
    ys, mxs, actions = initialization_forward(xs)
    ys = jax.block_until_ready(ys)
    assert ys.shape == xs.shape and ys.dtype == xs.dtype
    assert jnp.array_equal(ys, xs)
    assert len(mxs) == xs.shape[0]
    assert all(m.task is None for m in mxs)
    assert actions is None

    # Case 2: with tasks (one per sample).
    tasks = (3, 7)
    ys2, mxs2, actions2 = initialization_forward(xs, tasks=tasks)
    ys2 = jax.block_until_ready(ys2)
    assert jnp.array_equal(ys2, xs)
    assert [m.task for m in mxs2] == list(tasks)
    assert actions2 is None

    # Case 3: force the Pallas HBM->HBM copy kernel on the small test input
    # (bypass disabled) to exercise the kernel path.
    ys3, mxs3, actions3 = initialization_forward(
        xs, materialize=True, small_bypass_bytes=0
    )
    ys3 = jax.block_until_ready(ys3)
    assert ys3.shape == xs.shape and ys3.dtype == xs.dtype
    assert jnp.array_equal(ys3, xs)
    assert len(mxs3) == xs.shape[0] and actions3 is None

    # Case 4: a larger input through the same single-DMA kernel
    # ((8,32,32,32) f32 = 1 MiB).
    xl = jax.random.normal(jax.random.PRNGKey(1), (8, 32, 32, 32), jnp.float32)
    yl, mxl, al = initialization_forward(xl, materialize=True, small_bypass_bytes=0)
    yl = jax.block_until_ready(yl)
    assert jnp.array_equal(yl, xl)
    assert len(mxl) == xl.shape[0] and al is None

    print("KERNEL_OK")
</pallas_src>

<mosaic_0001>
module attributes {stable_mosaic.version = 11 : i64} {
  func.func @_hbm_copy_kernel(%arg0: memref<2x4x16x16xf32, #tpu.memory_space<any>>, %arg1: memref<2x4x16x16xf32, #tpu.memory_space<any>>, %arg2: memref<!tpu.dma_semaphore, #tpu.memory_space<semaphore_mem>>) attributes {dimension_semantics = [], scalar_prefetch = 0 : i64, scratch_operands = 1 : i64, tpu.core_type = #tpu.core_type<tc>} {
    tpu.enqueue_dma source(%arg0 : memref<2x4x16x16xf32, #tpu.memory_space<any>>) target(%arg1 : memref<2x4x16x16xf32, #tpu.memory_space<any>>) target_semaphore(%arg2 : memref<!tpu.dma_semaphore, #tpu.memory_space<semaphore_mem>>)
    tpu.wait_dma2 semaphore(%arg2 : memref<!tpu.dma_semaphore, #tpu.memory_space<semaphore_mem>>) src(%arg0 : memref<2x4x16x16xf32, #tpu.memory_space<any>>) dst(%arg1 : memref<2x4x16x16xf32, #tpu.memory_space<any>>)
    return
  }
}

</mosaic_0001>

<bundles_post_ra>
// kernel: tpu_custom_call.1
= control target key start
LH: loop header
LB: loop body
LE: loop exit
PB: predicated region body
PF: predicated region fallthrough
CT: control target
= control target key end

     0   :  { %s34_s12 = smov [#allocation2]   ;;  %s35_s13 = smov [#allocation3]   ;;  %s53_s0 = inlined_call_operand.hbm [shape: f32[2,4,16,16], index: 0, kind: input, shape index: {}]   ;;  %s54_s1 = inlined_call_operand.hbm [shape: f32[2,4,16,16], index: 1, kind: output, shape index: {}]  }
   0x1   :  { %s10_s8 = sshll.u32 %s53_s0, 4  ;;  %s12_s11 = sshll.u32 %s54_s1, 4  ;;  %s11_s8 = int_to_ptr.hbm [resolvable:$true] %s10_s8  ;;  %s13_s11 = int_to_ptr.hbm [resolvable:$true] %s12_s11 }
   0x2   :  { %s36_s14 = smov 0  }
   0x3   :  { %16 = dma.general %s11_s8, 2048, %s13_s11, %s34_s12, %s35_s13, [#allocation4], %s36_s14, 0  }
   0x4   :  { %32 = dma.done.wait [#allocation2], 2048 }
   0x5   :  { %33 = vsyncadd [#allocation2], 4294965248 }
   0x6   :  { %22 = vsyncmov [#allocation2] }
   0x9   :  { %s23_s15 = vpop.sfrf %22 }
   0xa   :  { %p28_p0 = scmp.ne.s32.totalorder %s23_s15, 0 }
   0xc   :  { %27 = shalt.err (%p28_p0)  }

</bundles_post_ra>
